<compile_context>
chip_gen: v7x
topology: tpu7x:2x2x1
jax: 0.10.0
libtpu: 0.0.40
codegen_flags: <defaults>
</compile_context>

<pallas_src>
import functools
import math

import jax
import jax.numpy as jnp
from jax import lax
from jax.experimental import pallas as pl
from jax.experimental.pallas import tpu as pltpu

# Python float -> becomes a literal inside the kernel (NOT a captured traced constant).
_LOG2 = math.log(2.0)


def _softplus(x):
    # numerically-stable softplus, matches torch.nn.functional.softplus
    return jnp.maximum(x, 0.0) + jnp.log1p(jnp.exp(-jnp.abs(x)))


def _round_up(x, m):
    return ((x + m - 1) // m) * m


def _jsd_g2l_kernel(g_ref, h_ref, hn_ref, pos_ref, neg_ref, *, n_valid, tile_n):
    # g_ref   : (1, D)             graph (anchor) embedding
    # h_ref   : (TILE_N, D)        tile of positive node embeddings (from h)
    # hn_ref  : (TILE_N, D)        tile of corrupted node embeddings (from hn)
    # pos_ref : (1, 1, TILE_N)     per-core, per-lane partial sums of positive terms (resident)
    # neg_ref : (1, 1, TILE_N)     per-core, per-lane partial sums of negative terms (resident)
    p = pl.program_id(0)          # which half of the rows (parallel axis, v7x 2 TCs)
    t = pl.program_id(1)          # tile within the half (arbitrary / reduction axis)
    n_half = pl.num_programs(1)

    @pl.when(t == 0)
    def _():
        pos_ref[...] = jnp.zeros_like(pos_ref)
        neg_ref[...] = jnp.zeros_like(neg_ref)

    g = g_ref[...].astype(jnp.float32)       # (1, D)
    h = h_ref[...].astype(jnp.float32)       # (TILE_N, D)
    hn = hn_ref[...].astype(jnp.float32)     # (TILE_N, D)

    # Lane-dense similarity rows: contract on D -> (1, TILE_N). MXU is otherwise
    # idle here, and the lane-dense output keeps the EUP/VPU chain below at full
    # lane utilization (vs. a (TILE_N, 1) single-lane column).
    dn = (((1,), (1,)), ((), ()))
    sim_p = lax.dot_general(g, h, dn, preferred_element_type=jnp.float32)    # (1, TILE_N)
    sim_n = lax.dot_general(g, hn, dn, preferred_element_type=jnp.float32)   # (1, TILE_N)

    # Valid-lane mask: handles the ragged last tile and (clamped) overrun tiles.
    # NOTE: must use the UNCLAMPED tile index (p * n_half + t); the index_map clamps
    # overrun tiles to a valid block, and this mask is what zeroes their contribution.
    row0 = (p * n_half + t) * tile_n
    cols = row0 + lax.broadcasted_iota(jnp.int32, (1, tile_n), 1)
    valid = cols < n_valid

    pos_terms = jnp.where(valid, _LOG2 - _softplus(-sim_p), 0.0)             # (1, TILE_N)
    neg_terms = jnp.where(valid, _softplus(-sim_n) + sim_n - _LOG2, 0.0)     # (1, TILE_N)

    # Per-lane accumulation (no cross-lane XLU reduce per step); wrapper sums lanes.
    pos_ref[...] += pos_terms[None]
    neg_ref[...] += neg_terms[None]


def _jsd_loss_pallas(g, h, hn):
    n, d = h.shape
    itemsize = jnp.dtype(h.dtype).itemsize
    # Sublane multiple depends on dtype packing: f32 -> 8, bf16 -> 16, int8/fp8 -> 32.
    sublane = max(8, 32 // itemsize)
    # VMEM lane footprint of one row (last dim is lane-padded to a multiple of 128).
    lane_d = max(128, _round_up(d, 128))

    # Row-tile cap from an explicit VMEM budget for the double-buffered h/hn tiles:
    # 2 inputs x 2 pipeline buffers x tile_n x lane_d x itemsize <= in_budget.
    in_budget = 24 * 1024 * 1024
    tile_cap = in_budget // (4 * lane_d * itemsize)
    tile_cap = max(sublane, min(8192, (tile_cap // 128) * 128))

    # Each of the two parallel halves covers ~n/2 rows; round to legal tile sizes.
    tile_n = _round_up(pl.cdiv(n, 2), sublane)
    if tile_n > 128:
        tile_n = _round_up(tile_n, 128)       # lane-dense sim rows / accumulator stores
    tile_n = min(tile_n, tile_cap)

    n_tiles = pl.cdiv(n, tile_n)              # total row tiles
    n_half = pl.cdiv(n_tiles, 2)              # tiles per parallel half

    def row_map(p, t):
        # Clamp so an overrun tile (only possible when n_tiles is odd / tiny) still
        # maps to a valid block; its contribution is masked to zero in the kernel
        # via the UNCLAMPED index, so the duplicated block never double-counts.
        return (jnp.minimum(p * n_half + t, n_tiles - 1), 0)

    kernel = functools.partial(_jsd_g2l_kernel, n_valid=n, tile_n=tile_n)

    # Raise the scoped VMEM limit so large tiles fit on v5e's 16 MiB default while
    # staying comfortably inside v7x's 64 MiB physical VMEM.
    in_vmem = 4 * tile_n * lane_d * itemsize
    vmem_limit = int(min(48 * 1024 * 1024,
                         max(32 * 1024 * 1024, in_vmem + 16 * 1024 * 1024)))

    cost = pl.CostEstimate(
        flops=int(4 * n * d),                 # ~2*2N*D MACs for the per-row dots
        transcendentals=int(4 * n),           # exp + log1p per row of h and hn
        bytes_accessed=int((2 * n * d + d) * itemsize + 2 * 2 * tile_n * 4),
    )

    pos_part, neg_part = pl.pallas_call(
        kernel,
        grid=(2, n_half),
        in_specs=[
            pl.BlockSpec((1, d), lambda p, t: (0, 0)),      # g (tiny, revisited)
            pl.BlockSpec((tile_n, d), row_map),             # h tiles -> positive terms
            pl.BlockSpec((tile_n, d), row_map),             # hn tiles -> negative terms
        ],
        out_specs=[
            pl.BlockSpec((1, 1, tile_n), lambda p, t: (p, 0, 0)),  # per-core/lane pos
            pl.BlockSpec((1, 1, tile_n), lambda p, t: (p, 0, 0)),  # per-core/lane neg
        ],
        out_shape=[
            jax.ShapeDtypeStruct((2, 1, tile_n), jnp.float32),
            jax.ShapeDtypeStruct((2, 1, tile_n), jnp.float32),
        ],
        compiler_params=pltpu.CompilerParams(
            dimension_semantics=("parallel", "arbitrary"),
            vmem_limit_bytes=vmem_limit),
        cost_estimate=cost,
    )(g, h, hn)

    # Per-lane partials: sum lanes and both cores (invalid lanes are exactly zero).
    e_pos = jnp.sum(pos_part) / n
    e_neg = jnp.sum(neg_part) / n
    return e_neg - e_pos


def single_branch_contrast_g2l(h, g, hn, extra_pos_mask=None, extra_neg_mask=None):
    """Forward of SingleBranchContrast(mode='G2L', loss=JSD), batch=None / hn path."""
    num_graphs = g.shape[0]
    assert num_graphs == 1, "G2L with neg_sample requires a single graph anchor"
    assert h.shape == hn.shape

    if extra_pos_mask is None and extra_neg_mask is None:
        # Structural fast path: positives are exactly the rows of h, negatives the
        # rows of hn (masked terms of the dense formulation are identically zero).
        return _jsd_loss_pallas(g, h, hn)

    # TODO(synk): extra_pos_mask/extra_neg_mask (masks can move positives across the
    # h/hn boundary) and the `batch is not None` scatter path are kept in plain JAX.
    n = h.shape[0]
    sample = jnp.concatenate([h, hn], axis=0).astype(jnp.float32)
    pos_mask = jnp.concatenate(
        [jnp.ones((1, n), jnp.float32), jnp.zeros((1, n), jnp.float32)], axis=1)
    neg_mask = 1.0 - pos_mask
    if extra_pos_mask is not None:
        pos_mask = jnp.logical_or(pos_mask.astype(bool),
                                  extra_pos_mask.astype(bool)).astype(jnp.float32)
    if extra_neg_mask is not None:
        neg_mask = jnp.logical_and(neg_mask.astype(bool),
                                   extra_neg_mask.astype(bool)).astype(jnp.float32)
    else:
        neg_mask = 1.0 - pos_mask
    sim = g.astype(jnp.float32) @ sample.T
    e_pos = jnp.sum(_LOG2 - _softplus(-sim * pos_mask)) / jnp.sum(pos_mask)
    neg_sim = sim * neg_mask
    e_neg = jnp.sum(_softplus(-neg_sim) + neg_sim - _LOG2) / jnp.sum(neg_mask)
    return e_neg - e_pos


def _reference_loss(h, g, hn):
    # Pure-JAX reference of the dense masked math, for a sanity check.
    sample = jnp.concatenate([h, hn], axis=0).astype(jnp.float32)
    n = h.shape[0]
    pos = jnp.concatenate([jnp.ones((1, n)), jnp.zeros((1, n))], axis=1).astype(jnp.float32)
    neg = 1.0 - pos
    sim = g.astype(jnp.float32) @ sample.T
    e_pos = jnp.sum(_LOG2 - _softplus(-sim * pos)) / jnp.sum(pos)
    neg_sim = sim * neg
    e_neg = jnp.sum(_softplus(-neg_sim) + neg_sim - _LOG2) / jnp.sum(neg)
    return e_neg - e_pos


if __name__ == "__main__":
    key = jax.random.PRNGKey(0)

    # (N, D): node count / hidden dim.
    #   (8, 32)      tiny single-tile case
    #   (50, 32)     ragged tile + 2-way row split
    #   (300, 64)    >128-row tiles, ragged masking on the second core
    #   (20000, 32)  multi-tile-per-core accumulation + clamped overrun tile
    for (n, d) in [(8, 32), (50, 32), (300, 64), (20000, 32)]:
        k_h, k_g, k_hn = jax.random.split(jax.random.fold_in(key, n), 3)
        h = jax.random.normal(k_h, (n, d), dtype=jnp.float32)    # node embeddings
        g = jax.random.normal(k_g, (1, d), dtype=jnp.float32)    # graph embedding
        hn = jax.random.normal(k_hn, (n, d), dtype=jnp.float32)  # corrupted nodes

        loss = jax.block_until_ready(single_branch_contrast_g2l(h, g, hn))
        ref = _reference_loss(h, g, hn)
        assert jnp.allclose(loss, ref, rtol=1e-4, atol=1e-4), (n, d, loss, ref)

    print("KERNEL_OK")
</pallas_src>

<mosaic_0001>
module attributes {stable_mosaic.version = 11 : i64} {
  func.func @_jsd_g2l_kernel(%arg0: i32, %arg1: i32, %arg2: memref<1x32xf32, #tpu.memory_space<vmem>>, %arg3: memref<8x32xf32, #tpu.memory_space<vmem>>, %arg4: memref<8x32xf32, #tpu.memory_space<vmem>>, %arg5: memref<1x1x8xf32, #tpu.memory_space<vmem>>, %arg6: memref<1x1x8xf32, #tpu.memory_space<vmem>>) attributes {dimension_semantics = [#tpu.dimension_semantics<parallel>, #tpu.dimension_semantics<arbitrary>], iteration_bounds = array<i64: 2, 1>, scalar_prefetch = 0 : i64, scratch_operands = 0 : i64, tpu.core_type = #tpu.core_type<tc>, window_params = [{pipeline_mode = #tpu.pipeline_mode<synchronous>, transform_indices = @transform_0, window_bounds = array<i64: 1, 32>}, {transform_indices = @transform_1, window_bounds = array<i64: 8, 32>}, {transform_indices = @transform_2, window_bounds = array<i64: 8, 32>}, {transform_indices = @transform_3, window_bounds = array<i64: 1, 1, 8>}, {transform_indices = @transform_4, window_bounds = array<i64: 1, 1, 8>}]} {
    %c0_i32 = arith.constant 0 : i32
    %0 = arith.cmpi eq, %arg1, %c0_i32 : i32
    %1 = arith.extui %0 : i1 to i32
    %c0_i32_0 = arith.constant 0 : i32
    %2 = arith.cmpi ne, %1, %c0_i32_0 : i32
    scf.if %2 {
      %cst_30 = arith.constant 0.000000e+00 : f32
      %53 = vector.broadcast %cst_30 : f32 to vector<1x1x8xf32>
      %c0_31 = arith.constant 0 : index
      %c0_32 = arith.constant 0 : index
      %c0_33 = arith.constant 0 : index
      %54 = vector.load %arg5[%c0_31, %c0_32, %c0_33] : memref<1x1x8xf32, #tpu.memory_space<vmem>>, vector<1x1x8xf32>
      tpu.vector_store %arg5[%c0_31, %c0_32, %c0_33], %53 {strides = array<i32>} : memref<1x1x8xf32, #tpu.memory_space<vmem>>, vector<1x1x8xf32>,
      %cst_34 = arith.constant 0.000000e+00 : f32
      %55 = vector.broadcast %cst_34 : f32 to vector<1x1x8xf32>
      %c0_35 = arith.constant 0 : index
      %c0_36 = arith.constant 0 : index
      %c0_37 = arith.constant 0 : index
      %56 = vector.load %arg6[%c0_35, %c0_36, %c0_37] : memref<1x1x8xf32, #tpu.memory_space<vmem>>, vector<1x1x8xf32>
      tpu.vector_store %arg6[%c0_35, %c0_36, %c0_37], %55 {strides = array<i32>} : memref<1x1x8xf32, #tpu.memory_space<vmem>>, vector<1x1x8xf32>,
    } else {
    }
    %c0 = arith.constant 0 : index
    %c0_1 = arith.constant 0 : index
    %3 = vector.load %arg2[%c0, %c0_1] : memref<1x32xf32, #tpu.memory_space<vmem>>, vector<1x32xf32>
    %c0_2 = arith.constant 0 : index
    %c0_3 = arith.constant 0 : index
    %4 = vector.load %arg3[%c0_2, %c0_3] : memref<8x32xf32, #tpu.memory_space<vmem>>, vector<8x32xf32>
    %c0_4 = arith.constant 0 : index
    %c0_5 = arith.constant 0 : index
    %5 = vector.load %arg4[%c0_4, %c0_5] : memref<8x32xf32, #tpu.memory_space<vmem>>, vector<8x32xf32>
    %cst = arith.constant dense<0.000000e+00> : vector<1x8xf32>
    %6 = tpu.matmul %3, %4, %cst {dimension_numbers = #tpu.dot_dimension_numbers<[1], [1], [0], [0], [0, 0, 1, 0], [], []>} : vector<1x32xf32>, vector<8x32xf32>, vector<1x8xf32> -> vector<1x8xf32>
    %cst_6 = arith.constant dense<0.000000e+00> : vector<1x8xf32>
    %7 = tpu.matmul %3, %5, %cst_6 {dimension_numbers = #tpu.dot_dimension_numbers<[1], [1], [0], [0], [0, 0, 1, 0], [], []>} : vector<1x32xf32>, vector<8x32xf32>, vector<1x8xf32> -> vector<1x8xf32>
    %c1_i32 = arith.constant 1 : i32
    %8 = arith.muli %arg0, %c1_i32 : i32
    %9 = arith.addi %8, %arg1 : i32
    %c8_i32 = arith.constant 8 : i32
    %10 = arith.muli %9, %c8_i32 : i32
    %11 = tpu.iota {dimensions = array<i32: 1>} : vector<1x8xi32>
    %12 = vector.broadcast %10 : i32 to vector<1x8xi32>
    %13 = arith.addi %12, %11 : vector<1x8xi32>
    %c8_i32_7 = arith.constant 8 : i32
    %14 = vector.broadcast %c8_i32_7 : i32 to vector<1x8xi32>
    %15 = arith.cmpi slt, %13, %14 : vector<1x8xi32>
    %cst_8 = arith.constant 0.000000e+00 : f32
    %16 = vector.broadcast %cst_8 : f32 to vector<1x8xf32>
    %17 = arith.subf %16, %6 : vector<1x8xf32>
    %cst_9 = arith.constant 0.000000e+00 : f32
    %18 = vector.broadcast %cst_9 : f32 to vector<1x8xf32>
    %19 = arith.maximumf %17, %18 : vector<1x8xf32>
    %20 = math.absf %17 : vector<1x8xf32>
    %cst_10 = arith.constant 0.000000e+00 : f32
    %21 = vector.broadcast %cst_10 : f32 to vector<1x8xf32>
    %22 = arith.subf %21, %20 : vector<1x8xf32>
    %23 = math.exp %22 : vector<1x8xf32>
    %24 = math.log1p %23 : vector<1x8xf32>
    %25 = arith.addf %19, %24 : vector<1x8xf32>
    %cst_11 = arith.constant 0.693147182 : f32
    %26 = vector.broadcast %cst_11 : f32 to vector<1x8xf32>
    %27 = arith.subf %26, %25 : vector<1x8xf32>
    %cst_12 = arith.constant 0.000000e+00 : f32
    %28 = vector.broadcast %cst_12 : f32 to vector<1x8xf32>
    %29 = arith.select %15, %27, %28 : vector<1x8xi1>, vector<1x8xf32>
    %cst_13 = arith.constant 0.000000e+00 : f32
    %30 = vector.broadcast %cst_13 : f32 to vector<1x8xf32>
    %31 = arith.subf %30, %7 : vector<1x8xf32>
    %cst_14 = arith.constant 0.000000e+00 : f32
    %32 = vector.broadcast %cst_14 : f32 to vector<1x8xf32>
    %33 = arith.maximumf %31, %32 : vector<1x8xf32>
    %34 = math.absf %31 : vector<1x8xf32>
    %cst_15 = arith.constant 0.000000e+00 : f32
    %35 = vector.broadcast %cst_15 : f32 to vector<1x8xf32>
    %36 = arith.subf %35, %34 : vector<1x8xf32>
    %37 = math.exp %36 : vector<1x8xf32>
    %38 = math.log1p %37 : vector<1x8xf32>
    %39 = arith.addf %33, %38 : vector<1x8xf32>
    %40 = arith.addf %39, %7 : vector<1x8xf32>
    %cst_16 = arith.constant 0.693147182 : f32
    %41 = vector.broadcast %cst_16 : f32 to vector<1x8xf32>
    %42 = arith.subf %40, %41 : vector<1x8xf32>
    %cst_17 = arith.constant 0.000000e+00 : f32
    %43 = vector.broadcast %cst_17 : f32 to vector<1x8xf32>
    %44 = arith.select %15, %42, %43 : vector<1x8xi1>, vector<1x8xf32>
    %c0_18 = arith.constant 0 : index
    %c0_19 = arith.constant 0 : index
    %c0_20 = arith.constant 0 : index
    %45 = vector.load %arg5[%c0_18, %c0_19, %c0_20] : memref<1x1x8xf32, #tpu.memory_space<vmem>>, vector<1x1x8xf32>
    %46 = vector.shape_cast %29 : vector<1x8xf32> to vector<1x1x8xf32>
    %47 = arith.addf %45, %46 : vector<1x1x8xf32>
    %c0_21 = arith.constant 0 : index
    %c0_22 = arith.constant 0 : index
    %c0_23 = arith.constant 0 : index
    %48 = vector.load %arg5[%c0_21, %c0_22, %c0_23] : memref<1x1x8xf32, #tpu.memory_space<vmem>>, vector<1x1x8xf32>
    tpu.vector_store %arg5[%c0_21, %c0_22, %c0_23], %47 {strides = array<i32>} : memref<1x1x8xf32, #tpu.memory_space<vmem>>, vector<1x1x8xf32>,
    %c0_24 = arith.constant 0 : index
    %c0_25 = arith.constant 0 : index
    %c0_26 = arith.constant 0 : index
    %49 = vector.load %arg6[%c0_24, %c0_25, %c0_26] : memref<1x1x8xf32, #tpu.memory_space<vmem>>, vector<1x1x8xf32>
    %50 = vector.shape_cast %44 : vector<1x8xf32> to vector<1x1x8xf32>
    %51 = arith.addf %49, %50 : vector<1x1x8xf32>
    %c0_27 = arith.constant 0 : index
    %c0_28 = arith.constant 0 : index
    %c0_29 = arith.constant 0 : index
    %52 = vector.load %arg6[%c0_27, %c0_28, %c0_29] : memref<1x1x8xf32, #tpu.memory_space<vmem>>, vector<1x1x8xf32>
    tpu.vector_store %arg6[%c0_27, %c0_28, %c0_29], %51 {strides = array<i32>} : memref<1x1x8xf32, #tpu.memory_space<vmem>>, vector<1x1x8xf32>,
    return
  }
  func.func @transform_0(%arg0: i32, %arg1: i32) -> (i32, i32) {
    %c0_i32 = arith.constant 0 : i32
    %c0_i32_0 = arith.constant 0 : i32
    %c0_i32_1 = arith.constant 0 : i32
    return %c0_i32, %c0_i32_0 : i32, i32
  }
  func.func @transform_1(%arg0: i32, %arg1: i32) -> (i32, i32) {
    %c1_i32 = arith.constant 1 : i32
    %0 = arith.muli %arg0, %c1_i32 : i32
    %1 = arith.addi %0, %arg1 : i32
    %c0_i32 = arith.constant 0 : i32
    %2 = arith.minsi %1, %c0_i32 : i32
    %c0_i32_0 = arith.constant 0 : i32
    %c0_i32_1 = arith.constant 0 : i32
    return %2, %c0_i32_0 : i32, i32
  }
  func.func @transform_2(%arg0: i32, %arg1: i32) -> (i32, i32) {
    %c1_i32 = arith.constant 1 : i32
    %0 = arith.muli %arg0, %c1_i32 : i32
    %1 = arith.addi %0, %arg1 : i32
    %c0_i32 = arith.constant 0 : i32
    %2 = arith.minsi %1, %c0_i32 : i32
    %c0_i32_0 = arith.constant 0 : i32
    %c0_i32_1 = arith.constant 0 : i32
    return %2, %c0_i32_0 : i32, i32
  }
  func.func @transform_3(%arg0: i32, %arg1: i32) -> (i32, i32, i32) {
    %c0_i32 = arith.constant 0 : i32
    %c0_i32_0 = arith.constant 0 : i32
    %c0_i32_1 = arith.constant 0 : i32
    return %arg0, %c0_i32, %c0_i32_0 : i32, i32, i32
  }
  func.func @transform_4(%arg0: i32, %arg1: i32) -> (i32, i32, i32) {
    %c0_i32 = arith.constant 0 : i32
    %c0_i32_0 = arith.constant 0 : i32
    %c0_i32_1 = arith.constant 0 : i32
    return %arg0, %c0_i32, %c0_i32_0 : i32, i32, i32
  }
}

</mosaic_0001>

<bundles_post_ra>
// kernel: tpu_custom_call.1
= control target key start
LH: loop header
LB: loop body
LE: loop exit
PB: predicated region body
PF: predicated region fallthrough
CT: control target
= control target key end

     0   :  { %s1390_s0 = inlined_call_operand.hbm [shape: f32[1,32], index: 0, kind: input, shape index: {}]   ;;  %s1391_s1 = inlined_call_operand.hbm [shape: f32[8,32], index: 1, kind: input, shape index: {}]   ;;  %s1392_s2 = inlined_call_operand.hbm [shape: f32[8,32], index: 2, kind: input, shape index: {}]   ;;  %s1393_s3 = inlined_call_operand.hbm [shape: f32[2,1,8], index: 3, kind: output, shape index: {0}]   ;;  %s1394_s4 = inlined_call_operand.hbm [shape: f32[2,1,8], index: 4, kind: output, shape index: {1}]  }
   0x1   :  { %1401 = sst [smem:[#allocation16_spill]] %s1391_s1 }
   0x2   :  { %10 = vsyncpa [#allocation3], 0 }
   0x3   :  { %11 = vsyncpa [#allocation6], 0 }
   0x4   :  { %13 = vsyncpa [#allocation6 + $0x1], 0 }
   0x5   :  { %14 = vsyncpa [#allocation4], 0 }
   0x6   :  { %16 = vsyncpa [#allocation4 + $0x1], 0 }
   0x7   :  { %17 = vsyncpa [#allocation10], 0 }
   0x8   :  { %19 = vsyncpa [#allocation10 + $0x1], 0  ;;  %s1095_s15 = smov 0   ;;  %s1097_s16 = smov 0  }
   0x9   :  { %s1099_s17 = smov 0   ;;  %s1101_s18 = smov 0  }
   0xa   :  { %s1103_s19 = smov 0   ;;  %s1105_s20 = smov 0  }
   0xb   :  { %s1107_s21 = smov 0   ;;  %s1109_s22 = smov 0  }
   0xc LB: > { %s37_s23 = sadd.s32 1, %s1057_s21  ;;  %p1030_p1 = scmp.ne.s32.totalorder %s1049_s19, 0  ;;  %s1061_s22 = sphi %s1109_s22, %s25_s22   ;;  %s1057_s21 = sphi %s1107_s21, %s1426_s21   ;;  %s1053_s20 = sphi %s1105_s20, %s1425_s20   ;;  %s1049_s19 = sphi %s1103_s19, %s1380_s19   ;;  %s1045_s18 = sphi %s1101_s18, %s1424_s18   ;;  %s1041_s17 = sphi %s1099_s17, %s1423_s17   ;;  %s1037_s16 = sphi %s1097_s16, %s1422_s16   ;;  %s1033_s15 = sphi %s1095_s15, %s1421_s15  }
   0xd   : > { %p39_p0 = scmp.ge.s32.totalorder %s37_s23, 2  ;;  %p79_p2 = scmp.eq.s32.totalorder %s1061_s22, 0 }
   0xe   : > { %p748_p5 = scmp.lt.s32.totalorder %s1061_s22, 2  ;;  %s203_s25 = sand.u32 1, %s1061_s22  }
   0xf   : > { %s1428_s23 = smov (%p39_p0, %s37_s23), 0  ;;  %p80_p3 = por %p1030_p1, %p79_p2 }
  0x10   : > { %1402 = sst [smem:[#allocation15_spill]] %s1428_s23  ;;  %s126_s24 = ssub.s32 %s1057_s21, %s1428_s23 }
  0x11   : > { %p1145_p6 = pnand %p748_p5, %p80_p3  ;;  %p1149_p7 = scmp.eq.s32.totalorder %s126_s24, 0 }
  0x12   : > { %s1063_s28 = smov [#allocation5]   ;;  %s1153_s30 = scalar_lea.sflag [#allocation6], %s203_s25 }
  0x13   : > { %s1404_s27 = scalar_select %p1149_p7, 1, 0 }
  0x14   : > { %s217_s29 = sshll.u32 %s1063_s28, 4  ;;  %s1405_s1 = sld [smem:[#allocation16_spill]]  ;;  %s218_s29 = int_to_ptr.vmem [resolvable:$true] %s217_s29 }
  0x15   : > { %p836_p9 = pneg %p1145_p6 }
  0x1a   : > { %s834_s7 = scalar_lea.hbm %s1405_s1, 128 }
  0x1b   : > { %p835_p8 = scmp.ne.s32.totalorder %s1405_s1, %s834_s7  ;;  %p841_p12 = scmp.lt.u32.totalorder %s834_s7, %s834_s7 }
  0x1c   : > { %p843_p13 = scmp.lt.u32.totalorder %s834_s7, %s1405_s1 }
  0x1d   : > { %p837_p10 = pnand %p836_p9, %p835_p8 }
  0x1e   : > { %p844_p0 = por %p843_p13, %p841_p12 }
  0x1f   : > { %p838_p11 = pneg %p837_p10 }
  0x21   : > { %p845_p1 = pnand %p844_p0, %p838_p11 }
  0x23   : > { %848 = shalt.err (!%p845_p1)
}
  0x24   : > { %s849_s12 = scalar_lea.vmem %s218_s29, 128  ;;  %s856_s13 = scalar_lea.vmem %s218_s29, 256 }
  0x25   : > { %p850_p2 = scmp.ne.s32.totalorder %s218_s29, %s849_s12  ;;  %p857_p4 = scmp.lt.s32.totalorder %s218_s29, %s218_s29 }
  0x26   : > { %p858_p7 = scmp.lt.s32.totalorder %s856_s13, %s849_s12 }
  0x27   : > { %p852_p3 = pnand %p850_p2, %p836_p9 }
  0x28   : > { %p859_p8 = por %p858_p7, %p857_p4 }
  0x29   : > { %p853_p5 = pneg %p852_p3 }
  0x2b   : > { %p860_p10 = pnand %p859_p8, %p853_p5 }
  0x2d   : > { %863 = shalt.err (!%p860_p10)
}
  0x2e   : > { %736 = dma.hbm_to_vmem [thread:$0]  (!%p1145_p6), %s1405_s1, 128, %s218_s29, %s1153_s30  }
  0x2f   : > { %s1179_s25 = sadd.s32 4294967295, %s1061_s22   ;;  %s681_s28 = sadd.s32 4294967294, %s1061_s22  }
  0x30   : > { %p84_p4 = scmp.ne.s32.totalorder %s1049_s19, %s1045_s18  ;;  %p1395_p7 = scmp.eq.s32.totalorder %s1179_s25, 0 }
  0x31   : > { %s129_s5 = sadd.s32 1, %s1041_s17  ;;  %p1406_p11 = scmp.ne.s32.totalorder %s1404_s27, 0 }
  0x32   : > { %p1193_p12 = por %p1395_p7, %p84_p4  ;;  %p139_p13 = scmp.ne.s32.totalorder %s1041_s17, %s1037_s16 }
  0x33   : > { %s1189_s6 = scalar_select %p1406_p11, %s1041_s17, %s129_s5  }
  0x34   : > { %s1407_s7 = scalar_select %p1193_p12, 1, 0 }
  0x35   : > { %p140_p0 = scmp.eq.s32.totalorder %s1179_s25, 1  ;;  %p145_p1 = scmp.ne.s32.totalorder %s1037_s16, %s1033_s15 }
  0x36   : > { %p146_p2 = scmp.eq.s32.totalorder %s681_s28, 1  ;;  %p682_p3 = scmp.ge.s32.totalorder %s1061_s22, 1 }
  0x37   : > { %p1203_p5 = por %p140_p0, %p139_p13  ;;  %p179_p8 = scmp.lt.s32.totalorder %s1061_s22, 3 }
  0x38   : > { %p1208_p10 = por %p146_p2, %p145_p1  ;;  %s1064_s8 = smov [#allocation2]  }
  0x39   : > { %s1408_s29 = scalar_select %p1203_p5, 1, 0 }
  0x3a   : > { %s1409_s18 = scalar_select %p1208_p10, 1, 0 }
  0x3b   : > { %p1212_p4 = pnand %p682_p3, %p179_p8  ;;  %s192_s9 = sshll.u32 %s1064_s8, 4  ;;  %s1218_s9 = int_to_ptr.vmem [resolvable:$true] %s192_s9 }
  0x3c   : > { %s1065_s10 = smov [#allocation7]   ;;  %s864_s24 = scalar_lea.hbm %s1392_s2, 128 }
  0x3d   : > { %s1410_s27 = scalar_select %p1212_p4, 1, 0 }
  0x3e   : > { %s238_s11 = sshll.u32 %s1065_s10, 4  ;;  %p729_p11 = pneg %p1212_p4  ;;  %s239_s11 = int_to_ptr.vmem [resolvable:$true] %s238_s11 }
  0x3f   : > { %p865_p0 = scmp.ne.s32.totalorder %s1392_s2, %s864_s24  ;;  %p871_p3 = scmp.lt.u32.totalorder %s864_s24, %s864_s24 }
  0x40   : > { %p1222_p13 = pnand %p729_p11, %p1395_p7  ;;  %p873_p8 = scmp.lt.u32.totalorder %s864_s24, %s1392_s2 }
  0x41   : > { %p867_p1 = pnand %p865_p0, %p836_p9 }
  0x42   : > { %s1411_s12 = scalar_select %p1222_p13, 1, 0 }
  0x43   : > { %p868_p2 = pneg %p867_p1  ;;  %p874_p11 = por %p873_p8, %p871_p3 }
  0x45   : > { %p875_p7 = pnand %p874_p11, %p868_p2 }
  0x47   : > { %878 = shalt.err (!%p875_p7)
}
  0x48   : > { %s879_s1 = scalar_lea.vmem %s239_s11, 128  ;;  %s886_s13 = scalar_lea.vmem %s239_s11, 256 }
  0x49   : > { %p880_p10 = scmp.ne.s32.totalorder %s239_s11, %s879_s1  ;;  %p887_p4 = scmp.lt.s32.totalorder %s239_s11, %s239_s11 }
  0x4a   : > { %p888_p13 = scmp.lt.s32.totalorder %s886_s13, %s879_s1 }
  0x4b   : > { %p882_p5 = pnand %p880_p10, %p836_p9 }
  0x4c   : > { %p889_p0 = por %p888_p13, %p887_p4 }
  0x4d   : > { %p883_p12 = pneg %p882_p5 }
  0x4f   : > { %p890_p1 = pnand %p889_p0, %p883_p12 }
  0x51   : > { %893 = shalt.err (!%p890_p1)
}
  0x52   : > { %739 = dma.hbm_to_vmem [thread:$0]  (!%p1145_p6), %s1392_s2, 128, %s239_s11, %s1153_s30  }
  0x53   : > { %s894_s8 = scalar_lea.hbm %s1390_s0, 16  ;;  %p1412_p7 = scmp.ne.s32.totalorder %s1411_s12, 0 }
  0x54   : > { %p895_p9 = scmp.ne.s32.totalorder %s1390_s0, %s894_s8  ;;  %p901_p4 = scmp.lt.u32.totalorder %s894_s8, %s1390_s0 }
  0x55   : > { %p896_p5 = pneg %p1412_p7 }
  0x57   : > { %p897_p12 = pnand %p896_p5, %p895_p9 }
  0x59   : > { %p898_p10 = pneg %p897_p12 }
  0x5b   : > { %p903_p13 = pnand %p901_p4, %p898_p10 }
  0x5d   : > { %906 = shalt.err (!%p903_p13)
}
  0x5e   : > { %s907_s30 = scalar_lea.vmem %s1218_s9, 16  ;;  %s914_s23 = scalar_lea.vmem %s1218_s9, 32 }
  0x5f   : > { %p908_p6 = scmp.ne.s32.totalorder %s1218_s9, %s907_s30  ;;  %p915_p8 = scmp.lt.s32.totalorder %s1218_s9, %s1218_s9 }
  0x60   : > { %p916_p11 = scmp.lt.s32.totalorder %s914_s23, %s907_s30 }
  0x61   : > { %p910_p2 = pnand %p908_p6, %p896_p5 }
  0x62   : > { %p917_p0 = por %p916_p11, %p915_p8 }
  0x63   : > { %p911_p3 = pneg %p910_p2 }
  0x65   : > { %p918_p1 = pnand %p917_p0, %p911_p3 }
  0x67   : > { %921 = shalt.err (!%p918_p1)
}
  0x68   : > { %732 = dma.hbm_to_vmem [thread:$0]  (!%p1412_p7), %s1390_s0, 16, %s1218_s9, [#allocation3]  }
  0x69   : > { %p1413_p9 = scmp.ne.s32.totalorder %s1410_s27, 0 }
  0x6a   : > { %p1414_p5 = scmp.eq.s32.totalorder (!%p1413_p9), %s1179_s25, 0 }
  0x6b   : > { %247 = sbr.rel (%p1413_p9) target bundleno = 418 (0x1a2), region = 32 }
  0x72   : > { %1015 = dma.done.wait (%p1414_p5), [#allocation3], 16   ;;  %p1415_p12 = pmov %p1414_p5 }
  0x73   : > { %s253_s14 = sand.u32 1, %s1179_s25   ;;  %s255_s24 = sand.u32 1, %s1049_s19  }
  0x74   : > { %1017 = vsyncadd (%p1415_p12), [#allocation3], 4294967280  ;;  %s691_s12 = sshll.u32 %s255_s24, 3  ;;  %s254_s28 = scalar_lea.sflag [#allocation6], %s253_s14 }
  0x75   : > { %s257_s5 = scalar_lea.vmem [#allocation5], %s691_s12  ;;  %p1416_p10 = scmp.ne.s32.totalorder %s1407_s7, 0 }
  0x77   : > { %1019 = dma.done.wait (%p1416_p10), %s254_s28, 256  }
  0x78   : > { %1021 = vsyncadd (%p1416_p10), %s254_s28, 4294967040  ;;  %v1066_v0 = vmov 0.0   ;;  %vm1067_vm0 = vmmov 0   ;;  %vm315_vm1 = vcmask 261120   ;;  %v313_v1 = vld [vmem:[%s257_s5] sm:$0xff]  ;;  %s266_s27 = scalar_lea.vmem [#allocation7], %s691_s12  ;;  %v467_v21 = vlaneseq }
  0x79   : > { %707 = vmatprep.subr.mxu0 %v1066_v0  ;;  %712 = vmatprep.subr.mxu1 %v1066_v0  ;;  %v314_v2 = vld [vmem:[%s266_s27] sm:$0xff]  ;;  %s1282_s25 = sand.u32 1, %s1037_s16   ;;  %vm309_vm2 = vcmask 57344   ;;  %s697_s8 = sshll.u32 %s1053_s20, 3 }
  0x7a   : > { %709 = vmatprep.mubr.msk.f32.mxu0 %vm1067_vm0, %v1066_v0  ;;  %714 = vmatprep.mubr.msk.f32.mxu1 %vm1067_vm0, %v1066_v0  ;;  %v312_v3 = vld [vmem:[#allocation2] sm:$0x1]  ;;  %s1285_s7 = scalar_lea.vmem [#allocation8], %s1282_s25  ;;  %s1290_s9 = scalar_lea.vmem [#allocation9], %s1282_s25  ;;  %v468_v24 = vand.u32 127, %v467_v21  ;;  %v469_v26 = vstv %s697_s8 }
  0x7b   : > { %708 = vmatpush3.xpose.msk.msra.mxu0 %vm315_vm1, %v313_v1  ;;  %713 = vmatpush3.xpose.msk.msra.mxu1 %vm315_vm1, %v314_v2  ;;  %310 = vst.msk [vmem:[%s1285_s7] sm:$0x1] %vm309_vm2, %v1066_v0  ;;  %311 = vst.msk [vmem:[%s1290_s9] sm:$0x1] %vm309_vm2, %v1066_v0  ;;  %s699_s10 = sshll.u32 %s1053_s20, 4  ;;  %s533_s1 = sshll.u32 %s1285_s7, 4  ;;  %s1305_s1 = int_to_ptr.vmem [resolvable:$true] %s533_s1 }
  0x7c   : > { %v470_v33 = vadd.s32 %v469_v26, %v468_v24  ;;  %s546_s26 = sshll.u32 %s1290_s9, 4  ;;  %s1303_s11 = scalar_lea.hbm %s1393_s3, %s699_s10  ;;  %s1314_s26 = int_to_ptr.vmem [resolvable:$true] %s546_s26 }
  0x7d   : > { %s1312_s14 = scalar_lea.hbm %s1394_s4, %s699_s10  ;;  %s517_s24 = scalar_lea.sflag [#allocation4], %s1282_s25 }
  0x7e   : > { %710 = vmatmul.mubr.msk.f32.vlgmr.msra.gmra.mrb[0].mxu0 %vm315_vm1, %v312_v3  ;;  %715 = vmatmul.mubr.msk.f32.vlgmr.msra.gmra.mrb[0].mxu1 %vm315_vm1, %v312_v3  ;;  %vm471_vm5 = vcmp.lt.s32.totalorder %v470_v33, 8  ;;  %s922_s12 = scalar_lea.vmem %s1305_s1, 16  ;;  %p1417_p4 = scmp.ne.s32.totalorder %s1408_s29, 0 }
  0x7f   : > { %p923_p7 = scmp.ne.s32.totalorder %s1305_s1, %s922_s12  ;;  %s1068_s28 = smov [#allocation8]  }
  0x80   : > { %s926_s5 = sshll.u32 %s1068_s28, 4  ;;  %s927_s5 = int_to_ptr.vmem [resolvable:$false] %s926_s5 }
  0x81   : > { %p924_p13 = pnand %p923_p7, %p1417_p4  ;;  %s928_s27 = scalar_lea.vmem %s927_s5, 32 }
  0x82   : > { %v509_v43 = vld [vmem:[%s1285_s7] sm:$0x1]  ;;  %p929_p2 = scmp.lt.s32.totalorder %s1305_s1, %s927_s5  ;;  %p930_p3 = scmp.lt.s32.totalorder %s928_s27, %s922_s12 }
  0x83   : > { %v513_v48 = vld [vmem:[%s1290_s9] sm:$0x1]  ;;  %p925_p6 = pneg %p924_p13 }
  0x84   : > { %p931_p8 = por %p930_p3, %p929_p2 }
  0x86   : > { %p932_p11 = pnand %p931_p8, %p925_p6 }
 0x151   : > { %v388_v4 = vpop.f32.mrb[0].mxu0  ;;  %v461_v5 = vpop.f32.mrb[0].mxu1 }
 0x152   : > { %v472_v6 = vsub.f32 0.0, %v388_v4  ;;  %v490_v7 = vsub.f32 0.0, %v461_v5  ;;  %v716_v8 = vpop.f32.mrb[1].mxu1  ;;  %v711_v9 = vpop.f32.mrb[1].mxu0 }
 0x154   : > { %v474_v10 = vand.u32 2147483647, %v472_v6  ;;  %v492_v11 = vand.u32 2147483647, %v490_v7  ;;  %v473_v34 = vmax.f32 %v472_v6, 0.0  ;;  %v491_v38 = vmax.f32 %v490_v7, 0.0 }
 0x156   : > { %v475_v12 = vsub.f32 0.0, %v474_v10  ;;  %v493_v13 = vsub.f32 0.0, %v492_v11 }
 0x158   : > { %v476_v14 = vmul.f32 1.442695, %v475_v12  ;;  %v494_v15 = vmul.f32 1.442695, %v493_v13 }
 0x15a   : > { %826 = vpow2.f32 %v476_v14 }
 0x15b   : > { %828 = vpow2.f32 %v494_v15 }
 0x164   : > { %v827_v16 = vpop.eup %826 }
 0x165   : > { %v829_v17 = vpop.eup %828  ;;  %v478_v18 = vadd.f32 1.0, %v827_v16  ;;  %v481_v20 = vmul.f32 -0.5, %v827_v16  ;;  %v484_v25 = vand.u32 2147483647, %v827_v16 }
 0x166   : > { %v496_v19 = vadd.f32 1.0, %v829_v17  ;;  %v499_v22 = vmul.f32 -0.5, %v829_v17  ;;  %v502_v28 = vand.u32 2147483647, %v829_v17 }
 0x167   : > { %830 = vlog2.f32 %v478_v18  ;;  %v482_v23 = vadd.f32 1.0, %v481_v20  ;;  %vm485_vm3 = vcmp.lt.f32.partialorder %v484_v25, 0.0004427343 }
 0x168   : > { %832 = vlog2.f32 %v496_v19  ;;  %v500_v27 = vadd.f32 1.0, %v499_v22  ;;  %vm503_vm4 = vcmp.lt.f32.partialorder %v502_v28, 0.0004427343 }
 0x169   : > { %v483_v32 = vmul.f32 %v827_v16, %v482_v23 }
 0x16a   : > { %v501_v36 = vmul.f32 %v829_v17, %v500_v27 }
 0x171   : > { %v831_v29 = vpop.eup %830 }
 0x172   : > { %v833_v30 = vpop.eup %832  ;;  %v480_v31 = vmul.f32 0.6931472, %v831_v29 }
 0x173   : > { %v498_v35 = vmul.f32 0.6931472, %v833_v30 }
 0x174   : > { %v486_v37 = vsel %vm485_vm3, %v483_v32, %v480_v31 }
 0x175   : > { %v487_v39 = vadd.f32 %v486_v37, %v473_v34  ;;  %v504_v40 = vsel %vm503_vm4, %v501_v36, %v498_v35 }
 0x176   : > { %v505_v41 = vadd.f32 %v504_v40, %v491_v38 }
 0x177   : > { %v488_v42 = vsub.f32 0.6931472, %v487_v39 }
 0x178   : > { %v506_v44 = vadd.f32 %v505_v41, %v461_v5 }
 0x179   : > { %v489_v45 = vsel %vm471_vm5, %v488_v42, 0.0 }
 0x17a   : > { %v698_v46 = vadd.f32 -0.6931472, %v506_v44  ;;  %v510_v47 = vadd.f32 %v509_v43, %v489_v45 }
 0x17c   : > { %v508_v49 = vsel %vm471_vm5, %v698_v46, 0.0  ;;  %512 = vst.msk [vmem:[%s1285_s7] sm:$0x1] %vm309_vm2, %v510_v47 }
 0x17d   : > { %v514_v50 = vadd.f32 %v513_v48, %v508_v49 }
 0x17e   : > { %935 = shalt.err (!%p932_p11)
}
 0x17f   : > { %s936_s7 = scalar_lea.hbm %s1303_s11, 16  ;;  %s940_s30 = scalar_lea.hbm %s1393_s3, 32 }
 0x180   : > { %p937_p0 = scmp.ne.s32.totalorder %s1303_s11, %s936_s7  ;;  %p941_p5 = scmp.lt.u32.totalorder %s1303_s11, %s1393_s3 }
 0x181   : > { %p942_p12 = scmp.lt.u32.totalorder %s940_s30, %s936_s7  ;;  %p944_p7 = scmp.lt.u32.totalorder %s936_s7, %s1303_s11 }
 0x182   : > { %p938_p1 = pnand %p937_p0, %p1417_p4 }
 0x183   : > { %p943_p10 = por %p942_p12, %p941_p5 }
 0x184   : > { %p939_p9 = pneg %p938_p1 }
 0x185   : > { %p945_p13 = por %p944_p7, %p943_p10 }
 0x187   : > { %p946_p6 = pnand %p945_p13, %p939_p9 }
 0x189   : > { %949 = shalt.err (!%p946_p6)
}
 0x18a   : > { %725 = dma.vmem_to_hbm [thread:$0]  (%p1417_p4), %s1305_s1, 16, %s1303_s11, %s517_s24   ;;  %515 = vst.msk [vmem:[%s1290_s9] sm:$0x1] %vm309_vm2, %v514_v50 }
 0x18b   : > { %s521_s13 = scalar_lea.sflag [#allocation10], %s1282_s25  ;;  %s950_s12 = scalar_lea.vmem %s1314_s26, 16 }
 0x18c   : > { %p951_p2 = scmp.ne.s32.totalorder %s1314_s26, %s950_s12  ;;  %s1069_s28 = smov [#allocation9]  }
 0x18d   : > { %s954_s5 = sshll.u32 %s1069_s28, 4  ;;  %s955_s5 = int_to_ptr.vmem [resolvable:$false] %s954_s5 }
 0x18e   : > { %p952_p3 = pnand %p951_p2, %p1417_p4  ;;  %s956_s27 = scalar_lea.vmem %s955_s5, 32 }
 0x18f   : > { %p957_p11 = scmp.lt.s32.totalorder %s1314_s26, %s955_s5  ;;  %p958_p0 = scmp.lt.s32.totalorder %s956_s27, %s950_s12 }
 0x190   : > { %p953_p8 = pneg %p952_p3 }
 0x191   : > { %p959_p1 = por %p958_p0, %p957_p11 }
 0x193   : > { %p960_p9 = pnand %p959_p1, %p953_p8 }
 0x195   : > { %963 = shalt.err (!%p960_p9)
}
 0x196   : > { %s964_s25 = scalar_lea.hbm %s1312_s14, 16  ;;  %s968_s11 = scalar_lea.hbm %s1394_s4, 32 }
 0x197   : > { %p965_p5 = scmp.ne.s32.totalorder %s1312_s14, %s964_s25  ;;  %p969_p7 = scmp.lt.u32.totalorder %s1312_s14, %s1394_s4 }
 0x198   : > { %p970_p13 = scmp.lt.u32.totalorder %s968_s11, %s964_s25  ;;  %p972_p2 = scmp.lt.u32.totalorder %s964_s25, %s1312_s14 }
 0x199   : > { %p966_p12 = pnand %p965_p5, %p1417_p4 }
 0x19a   : > { %p971_p6 = por %p970_p13, %p969_p7 }
 0x19b   : > { %p967_p10 = pneg %p966_p12 }
 0x19c   : > { %p973_p3 = por %p972_p2, %p971_p6 }
 0x19e   : > { %p974_p8 = pnand %p973_p3, %p967_p10 }
 0x1a0   : > { %977 = shalt.err (!%p974_p8)
}
 0x1a1   : > { %726 = dma.vmem_to_hbm [thread:$0]  (%p1417_p4), %s1314_s26, 16, %s1312_s14, %s521_s13  }
 0x1a2 PF: > { %s558_s8 = sand.u32 1, %s1033_s15   ;;  %p1418_p11 = scmp.ne.s32.totalorder %s1409_s18, 0 }
 0x1a3   : > { %p1419_p0 = scmp.ge.s32.totalorder %s1061_s22, 2  ;;  %s559_s10 = scalar_lea.sflag [#allocation4], %s558_s8 }
 0x1a5   : > { %p741_p1 = pnand %p1419_p0, %p1418_p11 }
 0x1a7   : > { %1023 = dma.done.wait (!%p741_p1), %s559_s10, 16  }
 0x1a8   : > { %1025 = vsyncadd (!%p741_p1), %s559_s10, 4294967280  ;;  %s567_s30 = scalar_lea.sflag [#allocation10], %s558_s8 }
 0x1a9   : > { %1027 = dma.done.wait (!%p741_p1), %s567_s30, 16  }
 0x1aa   : > { %1029 = vsyncadd (!%p741_p1), %s567_s30, 4294967280  ;;  %s25_s22 = sadd.s32 1, %s1061_s22   ;;  %s1420_s29 = sld [smem:[#allocation15_spill]] }
 0x1ab   : > { %p22_p9 = scmp.ge.s32.totalorder %s25_s22, 4   ;;  %s1421_s15 = smov %s1037_s16 }
 0x1ac   : > { %s1422_s16 = smov %s1041_s17  ;;  %s1423_s17 = smov %s1189_s6 }
 0x1ad   : > { %s1424_s18 = smov %s1049_s19  ;;  %s1380_s19 = smov 0  }
 0x1ae   : > { %s1425_s20 = smov %s1057_s21  ;;  %24 = sbr.rel (!%p22_p9) target bundleno = 12 (0xc), region = 114 }
 0x1b0   : > { %s1426_s21 = smov %s1420_s29 }
 0x1b5   :  { %571 = vsyncpa [#allocation3], 1 }
 0x1b6   :  { %573 = vsyncpa [#allocation3 + $0x1], 1 }
 0x1b7   :  { %574 = vsyncpa [#allocation6], 1 }
 0x1b8   :  { %576 = vsyncpa [#allocation6 + $0x1], 1 }
 0x1b9   :  { %577 = vsyncpa [#allocation4], 1 }
 0x1ba   :  { %579 = vsyncpa [#allocation4 + $0x1], 1 }
 0x1bb   :  { %580 = vsyncpa [#allocation10], 1 }
 0x1bc   :  { %582 = vsyncpa [#allocation10 + $0x1], 1 }

</bundles_post_ra>
